<compile_context>
chip_gen: v7x
topology: tpu7x:2x2x1
jax: 0.10.0
libtpu: 0.0.40
codegen_flags: <defaults>
</compile_context>

<pallas_src>
import jax
import jax.numpy as jnp
from jax import lax
from jax.experimental import pallas as pl
from jax.experimental.pallas import tpu as pltpu


def _down_kernel(x_ref, w_ref, b_ref, a_ref, o_ref):
    cin = w_ref.shape[1]
    x = x_ref[...]                                        # (tho, 2, Wo, 2*Cin)
    # 2x2 max pool, fused in-kernel (slices on non-minor / lane dims only):
    hp = jnp.maximum(x[:, 0], x[:, 1])                    # H-pair max -> (tho, Wo, 2*Cin)
    pooled = jnp.maximum(hp[..., :cin], hp[..., cin:])    # W-pair max -> (tho, Wo, Cin)
    tho, wo, _ = pooled.shape
    p2 = pooled.reshape(tho * wo, cin)                    # (S, Cin); whole-tile merge when Wo%8==0
    # 1x1 conv == channel matmul; produce channels-major (Cout, S) so the
    # output slab is already NCHW-flattened (lane axis = spatial, lane-dense).
    y = lax.dot_general(w_ref[...], p2,
                        dimension_numbers=(((1,), (1,)), ((), ())),
                        preferred_element_type=jnp.float32)   # (Cout, S)
    y = y + b_ref[...]                                    # (Cout, 1) broadcast over lanes
    alpha = a_ref[0]                                      # PReLU slope (scalar, SMEM)
    o_ref[...] = jnp.where(y > 0, y, alpha * y).astype(o_ref.dtype)


def _pick_row_tile(n, ho, wo, cin, cout, budget_bytes=8 * 1024 * 1024):
    """Largest divisor of Ho whose (single-copy) blocks fit the VMEM budget,
    with tho*Wo a multiple of 128 (or the full extent), preferring >=2 grid
    steps so the pipeline / megacore has something to overlap."""
    lanes_in = -(-2 * cin // 128) * 128
    sub_in = -(-wo // 8) * 8
    sub_out = -(-cout // 8) * 8

    def block_bytes(t):
        in_b = t * 2 * sub_in * lanes_in * 4
        out_b = sub_out * (-(-(t * wo) // 128) * 128) * 4
        return in_b + out_b

    divisors = [d for d in range(1, ho + 1) if ho % d == 0]
    valid = [d for d in divisors if d == ho or (d * wo) % 128 == 0]
    smallest = min(valid)
    for d in sorted(valid, reverse=True):
        if block_bytes(d) <= budget_bytes and (n * (ho // d) >= 2 or d == smallest):
            return d
    return smallest


def down_forward(x_nchw, w_conv, b_conv, alpha):
    """x_nchw: (N, C, H, W).  Returns (N, 2C, H//2, W//2), like the PyTorch module."""
    n, cin, h, w = x_nchw.shape
    cout = w_conv.shape[0]
    ho, wo = h // 2, w // 2
    # MaxPool2d(2) floors odd spatial dims -> crop (no-op for even sizes).
    x_nchw = x_nchw[:, :, :2 * ho, :2 * wo]

    # One XLA transpose to channels-last; everything after is a free reshape.
    x5 = jnp.transpose(x_nchw, (0, 2, 3, 1)).reshape(n, ho, 2, wo, 2 * cin)
    x5 = x5.astype(jnp.float32)
    w2 = w_conv.reshape(cout, cin).astype(jnp.float32)
    b2 = b_conv.reshape(cout, 1).astype(jnp.float32)
    a1 = jnp.full((1,), alpha, jnp.float32)

    tho = _pick_row_tile(n, ho, wo, cin, cout)
    s = tho * wo
    grid = (n, ho // tho)

    out = pl.pallas_call(
        _down_kernel,
        out_shape=jax.ShapeDtypeStruct((n, cout, ho * wo), jnp.float32),
        grid_spec=pltpu.PrefetchScalarGridSpec(
            num_scalar_prefetch=0,
            grid=grid,
            in_specs=[
                # single contiguous input stream: (1, tho, 2, Wo, 2*Cin) slab
                pl.BlockSpec((None, tho, 2, wo, 2 * cin),
                             lambda i, j: (i, j, 0, 0, 0)),
                # conv weight / bias: constant block index -> fetched once,
                # not re-DMA'd per grid step
                pl.BlockSpec((cout, cin), lambda i, j: (0, 0)),
                pl.BlockSpec((cout, 1), lambda i, j: (0, 0)),
                pl.BlockSpec(memory_space=pltpu.MemorySpace.SMEM),  # PReLU alpha
            ],
            out_specs=pl.BlockSpec((None, cout, s), lambda i, j: (i, 0, j)),
        ),
        compiler_params=pltpu.CompilerParams(
            dimension_semantics=("parallel", "parallel"),
            vmem_limit_bytes=32 * 1024 * 1024,
        ),
    )(x5, w2, b2, a1)

    # (N, Cout, Ho*Wo) is already NCHW-flattened: final reshape is free.
    return out.reshape(n, cout, ho, wo)


def down_reference(x_nchw, w_conv, b_conv, alpha):
    """Plain-JAX reference matching PyTorch semantics."""
    n, c, h, w = x_nchw.shape
    cout = w_conv.shape[0]
    pooled = x_nchw.reshape(n, c, h // 2, 2, w // 2, 2).max(axis=(3, 5))
    y = jnp.einsum('nchw,oc->nohw', pooled, w_conv.reshape(cout, c))
    y = y + b_conv.reshape(1, cout, 1, 1)
    return jnp.where(y > 0, y, alpha * y)


if __name__ == "__main__":
    key = jax.random.PRNGKey(0)
    k_x, k_w, k_b = jax.random.split(key, 3)

    N, C, H, W = 2, 4, 16, 16          # channel_in = 4
    Cout = 2 * C

    x = jax.random.normal(k_x, (N, C, H, W), dtype=jnp.float32)
    # Conv2d(C, 2C, kernel_size=1) parameters, deterministic init
    w_conv = jax.random.normal(k_w, (Cout, C, 1, 1), dtype=jnp.float32) * 0.1
    b_conv = jax.random.normal(k_b, (Cout,), dtype=jnp.float32) * 0.1
    alpha = 0.25                        # PReLU default init

    down_jit = jax.jit(down_forward)
    out = down_jit(x, w_conv, b_conv, alpha)
    out = jax.block_until_ready(out)

    ref = down_reference(x, w_conv, b_conv, alpha)
    assert out.shape == (N, Cout, H // 2, W // 2)
    assert jnp.allclose(out, ref, atol=1e-4, rtol=1e-4)

    print("KERNEL_OK")
</pallas_src>

<mosaic_0001>
module attributes {stable_mosaic.version = 11 : i64} {
  func.func @_down_kernel(%arg0: i32, %arg1: i32, %arg2: memref<1x8x2x8x8xf32, #tpu.memory_space<vmem>>, %arg3: memref<8x4xf32, #tpu.memory_space<vmem>>, %arg4: memref<8x1xf32, #tpu.memory_space<vmem>>, %arg5: memref<1xf32, #tpu.memory_space<smem>>, %arg6: memref<1x8x64xf32, #tpu.memory_space<vmem>>) attributes {dimension_semantics = [#tpu.dimension_semantics<parallel>, #tpu.dimension_semantics<parallel>], iteration_bounds = array<i64: 2, 1>, scalar_prefetch = 0 : i64, scratch_operands = 0 : i64, tpu.core_type = #tpu.core_type<tc>, window_params = [{transform_indices = @transform_0, window_bounds = array<i64: 1, 8, 2, 8, 8>}, {pipeline_mode = #tpu.pipeline_mode<synchronous>, transform_indices = @transform_1, window_bounds = array<i64: 8, 4>}, {pipeline_mode = #tpu.pipeline_mode<synchronous>, transform_indices = @transform_2, window_bounds = array<i64: 8, 1>}, {transform_indices = @transform_3, window_bounds = array<i64: 1>}, {transform_indices = @transform_4, window_bounds = array<i64: 1, 8, 64>}]} {
    %c0 = arith.constant 0 : index
    %c0_0 = arith.constant 0 : index
    %c0_1 = arith.constant 0 : index
    %c0_2 = arith.constant 0 : index
    %c0_3 = arith.constant 0 : index
    %0 = vector.load %arg2[%c0, %c0_0, %c0_1, %c0_2, %c0_3] : memref<1x8x2x8x8xf32, #tpu.memory_space<vmem>>, vector<1x8x2x8x8xf32>
    %1 = vector.shape_cast %0 : vector<1x8x2x8x8xf32> to vector<8x2x8x8xf32>
    %2 = vector.extract_strided_slice %1 {offsets = [0, 0, 0, 0], sizes = [8, 1, 8, 8], strides = [1, 1, 1, 1]} : vector<8x2x8x8xf32> to vector<8x1x8x8xf32>
    %3 = vector.shape_cast %2 : vector<8x1x8x8xf32> to vector<8x8x8xf32>
    %4 = vector.extract_strided_slice %1 {offsets = [0, 1, 0, 0], sizes = [8, 1, 8, 8], strides = [1, 1, 1, 1]} : vector<8x2x8x8xf32> to vector<8x1x8x8xf32>
    %5 = vector.shape_cast %4 : vector<8x1x8x8xf32> to vector<8x8x8xf32>
    %6 = arith.maximumf %3, %5 : vector<8x8x8xf32>
    %7 = vector.extract_strided_slice %6 {offsets = [0, 0, 0], sizes = [8, 8, 4], strides = [1, 1, 1]} : vector<8x8x8xf32> to vector<8x8x4xf32>
    %8 = vector.extract_strided_slice %6 {offsets = [0, 0, 4], sizes = [8, 8, 4], strides = [1, 1, 1]} : vector<8x8x8xf32> to vector<8x8x4xf32>
    %9 = arith.maximumf %7, %8 : vector<8x8x4xf32>
    %10 = vector.shape_cast %9 : vector<8x8x4xf32> to vector<64x4xf32>
    %c0_4 = arith.constant 0 : index
    %c0_5 = arith.constant 0 : index
    %11 = vector.load %arg3[%c0_4, %c0_5] : memref<8x4xf32, #tpu.memory_space<vmem>>, vector<8x4xf32>
    %cst = arith.constant dense<0.000000e+00> : vector<8x64xf32>
    %12 = tpu.matmul %11, %10, %cst {dimension_numbers = #tpu.dot_dimension_numbers<[1], [1], [0], [0], [0, 0, 1, 0], [], []>} : vector<8x4xf32>, vector<64x4xf32>, vector<8x64xf32> -> vector<8x64xf32>
    %c0_6 = arith.constant 0 : index
    %c0_7 = arith.constant 0 : index
    %13 = vector.load %arg4[%c0_6, %c0_7] : memref<8x1xf32, #tpu.memory_space<vmem>>, vector<8x1xf32>
    %14 = vector.broadcast %13 : vector<8x1xf32> to vector<8x64xf32>
    %15 = arith.addf %12, %14 : vector<8x64xf32>
    %c0_8 = arith.constant 0 : index
    %16 = memref.load %arg5[%c0_8] : memref<1xf32, #tpu.memory_space<smem>>
    %cst_9 = arith.constant 0.000000e+00 : f32
    %17 = vector.broadcast %cst_9 : f32 to vector<8x64xf32>
    %18 = arith.cmpf ogt, %15, %17 : vector<8x64xf32>
    %19 = vector.broadcast %16 : f32 to vector<8x64xf32>
    %20 = arith.mulf %19, %15 : vector<8x64xf32>
    %21 = arith.select %18, %15, %20 : vector<8x64xi1>, vector<8x64xf32>
    %c0_10 = arith.constant 0 : index
    %c0_11 = arith.constant 0 : index
    %c0_12 = arith.constant 0 : index
    %22 = vector.load %arg6[%c0_10, %c0_11, %c0_12] : memref<1x8x64xf32, #tpu.memory_space<vmem>>, vector<1x8x64xf32>
    %23 = vector.shape_cast %22 : vector<1x8x64xf32> to vector<8x64xf32>
    %24 = vector.shape_cast %21 : vector<8x64xf32> to vector<1x8x64xf32>
    tpu.vector_store %arg6[%c0_10, %c0_11, %c0_12], %24 {strides = array<i32>} : memref<1x8x64xf32, #tpu.memory_space<vmem>>, vector<1x8x64xf32>,
    return
  }
  func.func @transform_0(%arg0: i32, %arg1: i32) -> (i32, i32, i32, i32, i32) {
    %c0_i32 = arith.constant 0 : i32
    %c0_i32_0 = arith.constant 0 : i32
    %c0_i32_1 = arith.constant 0 : i32
    %c0_i32_2 = arith.constant 0 : i32
    return %arg0, %arg1, %c0_i32, %c0_i32_0, %c0_i32_1 : i32, i32, i32, i32, i32
  }
  func.func @transform_1(%arg0: i32, %arg1: i32) -> (i32, i32) {
    %c0_i32 = arith.constant 0 : i32
    %c0_i32_0 = arith.constant 0 : i32
    %c0_i32_1 = arith.constant 0 : i32
    return %c0_i32, %c0_i32_0 : i32, i32
  }
  func.func @transform_2(%arg0: i32, %arg1: i32) -> (i32, i32) {
    %c0_i32 = arith.constant 0 : i32
    %c0_i32_0 = arith.constant 0 : i32
    %c0_i32_1 = arith.constant 0 : i32
    return %c0_i32, %c0_i32_0 : i32, i32
  }
  func.func @transform_3(%arg0: i32, %arg1: i32) -> i32 {
    %c0_i32 = arith.constant 0 : i32
    %c0_i32_0 = arith.constant 0 : i32
    return %c0_i32 : i32
  }
  func.func @transform_4(%arg0: i32, %arg1: i32) -> (i32, i32, i32) {
    %c0_i32 = arith.constant 0 : i32
    %c0_i32_0 = arith.constant 0 : i32
    return %arg0, %c0_i32, %arg1 : i32, i32, i32
  }
}

</mosaic_0001>

<bundles_post_ra>
// kernel: down_forward.1
= control target key start
LH: loop header
LB: loop body
LE: loop exit
PB: predicated region body
PF: predicated region fallthrough
CT: control target
= control target key end

     0   :  { %s663_s17 = smov 0   ;;  %s665_s18 = smov 0   ;;  %s725_s0 = inlined_call_operand.vmem [shape: f32[2,8,2,8,8], index: 0, kind: input, shape index: {}]   ;;  %s726_s1 = inlined_call_operand.vmem [shape: f32[8,4], index: 1, kind: input, shape index: {}]   ;;  %s727_s2 = inlined_call_operand.vmem [shape: f32[8,1], index: 2, kind: input, shape index: {}]   ;;  %s728_s3 = inlined_call_operand.<no memory space> [shape: f32[1], index: 3, kind: input, shape index: {}]   ;;  %s729_s4 = inlined_call_operand.vmem [shape: f32[2,8,64], index: 4, kind: output, shape index: {}]  }
   0x1   :  { %9 = sst [smem:[#allocation2]] %s728_s3  ;;  %s667_s19 = smov 0  }
   0x2 LB: > { %s27_s3 = sadd.s32 1, %s624_s18  ;;  %p496_p0 = scmp.ge.s32.totalorder %s628_s19, 1  ;;  %s628_s19 = sphi %s667_s19, %s15_s19   ;;  %s624_s18 = sphi %s665_s18, %s733_s18   ;;  %s620_s17 = sphi %s663_s17, %s732_s17  }
   0x3   : > { %p29_p1 = scmp.ge.s32.totalorder %s27_s3, 2  ;;  %p185_p2 = scmp.lt.s32.totalorder %s628_s19, 3 }
   0x5   : > { %s735_s3 = smov (%p29_p1, %s27_s3), 0  ;;  %p186_p3 = pnand %p496_p0, %p185_p2 }
   0x6   : > { %p219_p4 = scmp.lt.s32.totalorder (!%p186_p3), %s620_s17, 1  ;;  %v630_v0 = vmov (!%p186_p3), 0.0|0.0   ;;  %s631_s24 = smov (!%p186_p3), 124   ;;  %vm632_vm0 = vmmov (!%p186_p3), 0   ;;  %v633_v29 = vmov (!%p186_p3), 0.0   ;;  %v301_v30 = vld [vmem:[%s727_s2] sm:$0xff] (!%p186_p3) }
   0x7   : > { %189 = sbr.rel (%p186_p3) target bundleno = 393 (0x189), region = 36  ;;  %540 = vmatprep.subr.bf16.mxu0 (!%p186_p3), %v630_v0  ;;  %537 = vmatprep.mubr.msk.f32.mxu0 (!%p186_p3), %vm632_vm0, %v633_v29  ;;  %v634_v31 = vmov (!%p186_p3), 0   ;;  %vm307_vm1 = vcmask (!%p186_p3), 31744   ;;  %v300_v57 = vld [vmem:[%s726_s1] sm:$0xff] (!%p186_p3)  ;;  %s405_s29 = sld [smem:[#allocation2]] (!%p186_p3)  ;;  %vm410_vm4 = vcmask (!%p186_p3), 523264  }
   0x8   : > { %605 = vset.pattern.permute.xlu0 (!%p186_p3), %v634_v31  ;;  %vm693_vm2 = vmpackc.low (!%p186_p3), %vm307_vm1, %vm307_vm1 }
   0xd   : > { %v407_v60 = vstv (!%p186_p3), %s405_s29 }
   0xe   : > { %s737_s17 = smov (!%p219_p4, %s620_s17), 1 }
   0xf   : > { %s511_s20 = sshll.u32 %s737_s17, 7  ;;  %s499_s30 = sshll.u32 %s737_s17, 3 }
  0x10   : > { %s227_s23 = scalar_lea.vmem %s725_s0, %s511_s20  ;;  %s235_s7 = scalar_lea.vmem %s729_s4, %s499_s30 }
  0x11   : > { %v236_v1 = vld [vmem:[%s227_s23] sm:$0xff]  ;;  %v237_v2 = vld [vmem:[%s227_s23 + $0x8] sm:$0xff]  ;;  %v238_v3 = vld [vmem:[%s227_s23 + $0x10] sm:$0xff] }
  0x12   : > { %v239_v4 = vld [vmem:[%s227_s23 + $0x18] sm:$0xff]  ;;  %v252_v5 = vmax.f32 %v236_v1, %v237_v2  ;;  %v240_v6 = vld [vmem:[%s227_s23 + $0x20] sm:$0xff]  ;;  %v241_v7 = vld [vmem:[%s227_s23 + $0x28] sm:$0xff] }
  0x13   : > { %v253_v8 = vmax.f32 %v238_v3, %v239_v4  ;;  %v242_v9 = vld [vmem:[%s227_s23 + $0x30] sm:$0xff]  ;;  %v243_v10 = vld [vmem:[%s227_s23 + $0x38] sm:$0xff]  ;;  %v254_v11 = vmax.f32 %v240_v6, %v241_v7  ;;  %v244_v12 = vld [vmem:[%s227_s23 + $0x40] sm:$0xff] }
  0x14   : > { %v255_v13 = vmax.f32 %v242_v9, %v243_v10  ;;  %v245_v14 = vld [vmem:[%s227_s23 + $0x48] sm:$0xff]  ;;  %v246_v15 = vld [vmem:[%s227_s23 + $0x50] sm:$0xff]  ;;  %v247_v16 = vld [vmem:[%s227_s23 + $0x58] sm:$0xff] }
  0x15   : > { %v585_v17 = vpack.i.bf16 %v253_v8, %v252_v5  ;;  %v256_v18 = vmax.f32 %v244_v12, %v245_v14  ;;  %v257_v19 = vmax.f32 %v246_v15, %v247_v16  ;;  %v248_v20 = vld [vmem:[%s227_s23 + $0x60] sm:$0xff]  ;;  %v249_v21 = vld [vmem:[%s227_s23 + $0x68] sm:$0xff]  ;;  %v250_v22 = vld [vmem:[%s227_s23 + $0x70] sm:$0xff] }
  0x16   : > { %v251_v23 = vld [vmem:[%s227_s23 + $0x78] sm:$0xff]  ;;  %v258_v24 = vmax.f32 %v248_v20, %v249_v21  ;;  %v590_v25 = vpack.i.bf16 %v255_v13, %v254_v11 }
  0x17   : > { %586 = vrot.lane.b32.xlu0 %v585_v17, %s631_s24  ;;  %v595_v26 = vpack.i.bf16 %v257_v19, %v256_v18  ;;  %v259_v27 = vmax.f32 %v250_v22, %v251_v23 }
  0x19   : > { %596 = vrot.lane.b32.xlu1 %v595_v26, %s631_s24  ;;  %v600_v28 = vpack.i.bf16 %v259_v27, %v258_v24 }
  0x1b   : > { %591 = vrot.lane.b32.xlu0 %v590_v25, %s631_s24 }
  0x1d   : > { %601 = vrot.lane.b32.xlu1 %v600_v28, %s631_s24 }
  0x1f   : > { %304 = vperm.xlu0 %605, %v301_v30  }
  0x89   : > { %v587_v32 = vpop.permute.xlu0 %586 }
  0x8a   : > { %v589_v33 = vunpack.i.h.bf16 %v587_v32  ;;  %v588_v34 = vunpack.i.l.bf16 %v587_v32 }
  0x8b   : > { %v597_v44 = vpop.permute.xlu1 %596 }
  0x8c   : > { %v293_v35 = vmax.f32 %v253_v8, %v589_v33  ;;  %v292_v36 = vmax.f32 %v252_v5, %v588_v34  ;;  %v599_v46 = vunpack.i.h.bf16 %v597_v44  ;;  %v598_v47 = vunpack.i.l.bf16 %v597_v44 }
  0x8d   : > { %v592_v38 = vpop.permute.xlu0 %591 }
  0x8e   : > { %v541_v39 = vpack.c.bf16 %v293_v35, %v292_v36  ;;  %v594_v40 = vunpack.i.h.bf16 %v592_v38  ;;  %v593_v41 = vunpack.i.l.bf16 %v592_v38  ;;  %v297_v48 = vmax.f32 %v257_v19, %v599_v46 }
  0x8f   : > { %v296_v49 = vmax.f32 %v256_v18, %v598_v47  ;;  %v602_v50 = vpop.permute.xlu1 %601 }
  0x90   : > { %543 = vmatpush3.bf16.xpose.msk.msra.mxu0 %vm693_vm2, %v541_v39  ;;  %v295_v42 = vmax.f32 %v255_v13, %v594_v40  ;;  %v294_v43 = vmax.f32 %v254_v11, %v593_v41  ;;  %v604_v52 = vunpack.i.h.bf16 %v602_v50  ;;  %v603_v53 = vunpack.i.l.bf16 %v602_v50 }
  0x91   : > { %544 = vmatprep.subr.bf16.mxu0 %v630_v0  ;;  %v549_v51 = vpack.c.bf16 %v297_v48, %v296_v49 }
  0x92   : > { %v545_v45 = vpack.c.bf16 %v295_v42, %v294_v43  ;;  %v299_v54 = vmax.f32 %v259_v27, %v604_v52  ;;  %v298_v55 = vmax.f32 %v258_v24, %v603_v53 }
  0x94   : > { %v553_v56 = vpack.c.bf16 %v299_v54, %v298_v55 }
  0x98   : > { %547 = vmatpush3.bf16.xpose.msk.msra.mxu0 %vm693_vm2, %v545_v45 }
  0x99   : > { %548 = vmatprep.subr.bf16.mxu0 %v630_v0 }
  0x9e   : > { %v305_v58 = vpop.permute.xlu0 %304 }
  0xa0   : > { %551 = vmatpush3.bf16.xpose.msk.msra.mxu0 %vm693_vm2, %v549_v51 }
  0xa1   : > { %552 = vmatprep.subr.bf16.mxu0 %v630_v0 }
  0xa8   : > { %555 = vmatpush3.bf16.xpose.msk.msra.mxu0 %vm693_vm2, %v553_v56 }
  0xaf   : > { %538 = vmatmul.mubr.msk.f32.vlgmr.msra.gmra.mrb[0].mxu0 %vm307_vm1, %v300_v57 }
 0x182   : > { %v401_v59 = vpop.f32.mrb[0].mxu0 }
 0x183   : > { %v402_v61 = vadd.f32 %v401_v59, %v305_v58  ;;  %v539_v62 = vpop.f32.mrb[1].mxu0 }
 0x185   : > { %vm406_vm3 = vcmp.gt.f32.partialorder %v402_v61, 0.0  ;;  %v408_v63 = vmul.f32 %v407_v60, %v402_v61 }
 0x187   : > { %v409_v0 = vsel %vm406_vm3, %v402_v61, %v408_v63 }
 0x188   : > { %411 = vst.msk [vmem:[%s235_s7] sm:$0xff] %vm410_vm4, %v409_v0 }
 0x189 PF: > { %s15_s19 = sadd.s32 1, %s628_s19   ;;  %s732_s17 = smov %s624_s18 }
 0x18a   : > { %p12_p5 = scmp.ge.s32.totalorder %s15_s19, 4   ;;  %s733_s18 = smov %s735_s3 }
 0x18c   :  { %14 = sbr.rel (!%p12_p5) target bundleno = 2 (0x2), region = 66 }

</bundles_post_ra>
